<compile_context>
chip_gen: v7x
topology: tpu7x:2x2x1
jax: 0.10.0
libtpu: 0.0.40
codegen_flags: <defaults>
</compile_context>

<pallas_src>
import functools

import jax
import jax.numpy as jnp
from jax.experimental import pallas as pl
from jax.experimental.pallas import tpu as pltpu

_LANE = 128
_VMEM_LIMIT_BYTES = 48 * 1024 * 1024   # above 16/32 MiB scoped defaults, < v7x 64 MiB
_TARGET_BLOCK_BYTES = 4 * 1024 * 1024  # per x input block (conservative VMEM budget)


def _rmsnorm_kernel(x_ref, g_ref, o_ref, *, eps, inv_n):
    # x_ref: (row_tile, n_embd_padded)  g_ref: (1, n_embd_padded)
    x = x_ref[...].astype(jnp.float32)
    # Sum of squares over the (possibly zero-padded) lane axis, normalized by
    # the true n_embd so lane padding does not bias the mean.
    mean_sq = jnp.sum(x * x, axis=-1, keepdims=True) * inv_n
    inv_norm = jax.lax.rsqrt(mean_sq + eps)            # EUP rsqrt
    g = g_ref[...].astype(jnp.float32)
    o_ref[...] = (x * inv_norm * g).astype(o_ref.dtype)


def _round_up(v, m):
    return ((v + m - 1) // m) * m


def _pick_row_tile(rows, n_embd_padded, itemsize):
    # dtype-aware sublane multiple: f32 -> 8, bf16/f16 -> 16, int8/fp8 -> 32
    sublane = {4: 8, 2: 16, 1: 32}.get(itemsize, 8)
    row_bytes = n_embd_padded * itemsize
    tile = max(sublane, _TARGET_BLOCK_BYTES // row_bytes)
    tile = (tile // sublane) * sublane
    # Never larger than the (sublane-rounded) total row count.
    tile = min(tile, _round_up(rows, sublane))
    return max(tile, sublane)


@functools.partial(jax.jit, static_argnames=("eps",))
def rmsnorm(x, gain, eps=1e-6):
    """RMSNorm over the last axis of x, scaled by gain (shape (n_embd,))."""
    orig_shape = x.shape
    n_embd = orig_shape[-1]
    assert gain.shape == (n_embd,)

    x2d = x.reshape(-1, n_embd)
    rows = x2d.shape[0]
    itemsize = jnp.dtype(x.dtype).itemsize

    # Lane-dense last dim: pad to a multiple of 128.
    n_embd_p = _round_up(n_embd, _LANE)
    lane_pad = n_embd_p - n_embd

    # Large, dtype-aware row tile; pad rows instead of collapsing the grid.
    row_tile = _pick_row_tile(rows, n_embd_p, itemsize)
    rows_p = _round_up(rows, row_tile)
    row_pad = rows_p - rows

    if lane_pad or row_pad:
        x2d = jnp.pad(x2d, ((0, row_pad), (0, lane_pad)))
    g2d = gain.reshape(1, n_embd)
    if lane_pad:
        g2d = jnp.pad(g2d, ((0, 0), (0, lane_pad)))

    grid = (rows_p // row_tile,)

    out = pl.pallas_call(
        functools.partial(_rmsnorm_kernel, eps=eps, inv_n=1.0 / n_embd),
        out_shape=jax.ShapeDtypeStruct((rows_p, n_embd_p), x.dtype),
        grid_spec=pltpu.PrefetchScalarGridSpec(
            num_scalar_prefetch=0,
            grid=grid,
            in_specs=[
                pl.BlockSpec((row_tile, n_embd_p), lambda i: (i, 0)),
                # Constant block index -> gain stays resident in VMEM.
                pl.BlockSpec((1, n_embd_p), lambda i: (0, 0)),
            ],
            out_specs=pl.BlockSpec((row_tile, n_embd_p), lambda i: (i, 0)),
        ),
        compiler_params=pltpu.CompilerParams(
            dimension_semantics=("parallel",),
            vmem_limit_bytes=_VMEM_LIMIT_BYTES,
        ),
    )(x2d, g2d)

    if lane_pad or row_pad:
        out = out[:rows, :n_embd]
    return out.reshape(orig_shape)


def _rmsnorm_ref(x, gain, eps):
    xf = x.astype(jnp.float32)
    inv_norm = jax.lax.rsqrt(jnp.mean(xf * xf, axis=-1, keepdims=True) + eps)
    return (xf * inv_norm * gain.astype(jnp.float32)).astype(x.dtype)


if __name__ == "__main__":
    key = jax.random.PRNGKey(0)

    # Shapes implied by the module's usage: (batch, seq, n_embd).
    batch, seq, n_embd = 2, 8, 32
    x = jax.random.normal(key, (batch, seq, n_embd), dtype=jnp.float32)
    # Deterministic parameter init matching nn.Parameter(torch.ones(n_embd)).
    gain = jnp.ones((n_embd,), dtype=jnp.float32)

    y = jax.block_until_ready(rmsnorm(x, gain, eps=1e-6))
    y_ref = _rmsnorm_ref(x, gain, 1e-6)
    assert jnp.allclose(y, y_ref, atol=1e-5, rtol=1e-5), "mismatch vs reference"

    # Second small check: rows and n_embd both non-aligned (exercises the
    # row/lane zero-padding path).
    k2 = jax.random.PRNGKey(1)
    x2 = jax.random.normal(k2, (3, 5, 48), dtype=jnp.float32)
    g2 = jax.random.normal(jax.random.PRNGKey(2), (48,), dtype=jnp.float32)
    y2 = jax.block_until_ready(rmsnorm(x2, g2, eps=1e-6))
    y2_ref = _rmsnorm_ref(x2, g2, 1e-6)
    assert jnp.allclose(y2, y2_ref, atol=1e-5, rtol=1e-5), "mismatch (padded case)"

    print("KERNEL_OK")
</pallas_src>

<mosaic_0001>
module attributes {stable_mosaic.version = 11 : i64} {
  func.func @_rmsnorm_kernel(%arg0: i32, %arg1: memref<16x128xf32, #tpu.memory_space<vmem>>, %arg2: memref<1x128xf32, #tpu.memory_space<vmem>>, %arg3: memref<16x128xf32, #tpu.memory_space<vmem>>) attributes {dimension_semantics = [#tpu.dimension_semantics<parallel>], iteration_bounds = array<i64: 1>, scalar_prefetch = 0 : i64, scratch_operands = 0 : i64, tpu.core_type = #tpu.core_type<tc>, window_params = [{transform_indices = @transform_0, window_bounds = array<i64: 16, 128>}, {pipeline_mode = #tpu.pipeline_mode<synchronous>, transform_indices = @transform_1, window_bounds = array<i64: 1, 128>}, {transform_indices = @transform_2, window_bounds = array<i64: 16, 128>}]} {
    %c0 = arith.constant 0 : index
    %c0_0 = arith.constant 0 : index
    %0 = vector.load %arg1[%c0, %c0_0] : memref<16x128xf32, #tpu.memory_space<vmem>>, vector<16x128xf32>
    %1 = arith.mulf %0, %0 : vector<16x128xf32>
    %cst = arith.constant dense<0.000000e+00> : vector<16xf32>
    %2 = vector.multi_reduction <add>, %1, %cst [1] : vector<16x128xf32> to vector<16xf32>
    %3 = vector.shape_cast %2 : vector<16xf32> to vector<16x1xf32>
    %cst_1 = arith.constant 3.125000e-02 : f32
    %4 = vector.broadcast %cst_1 : f32 to vector<16x1xf32>
    %5 = arith.mulf %3, %4 : vector<16x1xf32>
    %cst_2 = arith.constant 9.99999997E-7 : f32
    %6 = vector.broadcast %cst_2 : f32 to vector<16x1xf32>
    %7 = arith.addf %5, %6 : vector<16x1xf32>
    %8 = math.rsqrt %7 : vector<16x1xf32>
    %c0_3 = arith.constant 0 : index
    %c0_4 = arith.constant 0 : index
    %9 = vector.load %arg2[%c0_3, %c0_4] : memref<1x128xf32, #tpu.memory_space<vmem>>, vector<1x128xf32>
    %10 = vector.broadcast %8 : vector<16x1xf32> to vector<16x128xf32>
    %11 = arith.mulf %0, %10 : vector<16x128xf32>
    %12 = vector.broadcast %9 : vector<1x128xf32> to vector<16x128xf32>
    %13 = arith.mulf %11, %12 : vector<16x128xf32>
    %c0_5 = arith.constant 0 : index
    %c0_6 = arith.constant 0 : index
    %14 = vector.load %arg3[%c0_5, %c0_6] : memref<16x128xf32, #tpu.memory_space<vmem>>, vector<16x128xf32>
    tpu.vector_store %arg3[%c0_5, %c0_6], %13 {strides = array<i32>} : memref<16x128xf32, #tpu.memory_space<vmem>>, vector<16x128xf32>,
    return
  }
  func.func @transform_0(%arg0: i32) -> (i32, i32) {
    %c0_i32 = arith.constant 0 : i32
    %c0_i32_0 = arith.constant 0 : i32
    return %arg0, %c0_i32 : i32, i32
  }
  func.func @transform_1(%arg0: i32) -> (i32, i32) {
    %c0_i32 = arith.constant 0 : i32
    %c0_i32_0 = arith.constant 0 : i32
    %c0_i32_1 = arith.constant 0 : i32
    return %c0_i32, %c0_i32_0 : i32, i32
  }
  func.func @transform_2(%arg0: i32) -> (i32, i32) {
    %c0_i32 = arith.constant 0 : i32
    %c0_i32_0 = arith.constant 0 : i32
    return %arg0, %c0_i32 : i32, i32
  }
}

</mosaic_0001>

<bundles_post_ra>
// kernel: rmsnorm.1
= control target key start
LH: loop header
LB: loop body
LE: loop exit
PB: predicated region body
PF: predicated region fallthrough
CT: control target
= control target key end

     0   :  { %s77_s0 = inlined_call_operand.vmem [shape: f32[16,128], index: 0, kind: input, shape index: {}]   ;;  %s78_s1 = inlined_call_operand.vmem [shape: f32[1,128], index: 1, kind: input, shape index: {}]   ;;  %s79_s2 = inlined_call_operand.vmem [shape: f32[16,128], index: 2, kind: output, shape index: {}]  }
   0x1   :  { %v11_v0 = vld [vmem:[%s77_s0] sm:$0xff]  ;;  %v12_v1 = vld [vmem:[%s77_s0 + $0x8] sm:$0xff] }
   0x2   :  { %v13_v2 = vmul.f32 %v11_v0, %v11_v0  ;;  %v14_v3 = vmul.f32 %v12_v1, %v12_v1  ;;  %v42_v11 = vld [vmem:[%s78_s1] ss:$0 sm:$0xff] }
   0x4   :  { %15 = vadd.xlane.f32.xlu0 %v13_v2 }
   0x8   :  { %17 = vadd.xlane.f32.xlu0 %v14_v3 }
  0x91   :  { %v16_v4 = vpop.xlane.xlu0 %15 }
  0x92   :  { %v19_v5 = vmul.f32 0.03125, %v16_v4 }
  0x94   :  { %v21_v6 = vadd.f32 1e-06, %v19_v5 }
  0x95   :  { %v18_v7 = vpop.xlane.xlu0 %17 }
  0x96   :  { %43 = vrsqrt.f32 %v21_v6  ;;  %v20_v8 = vmul.f32 0.03125, %v18_v7 }
  0x98   :  { %v22_v9 = vadd.f32 1e-06, %v20_v8 }
  0x9a   :  { %45 = vrsqrt.f32 %v22_v9 }
  0xa0   :  { %v44_v10 = vpop.eup %43 }
  0xa1   :  { %v26_v12 = vmul.f32 %v44_v10, %v11_v0 }
  0xa3   :  { %v34_v13 = vmul.f32 %v42_v11, %v26_v12 }
  0xa4   :  { %v46_v14 = vpop.eup %45 }
  0xa5   :  { %36 = vst [vmem:[%s79_s2] sm:$0xff] %v34_v13  ;;  %v27_v15 = vmul.f32 %v46_v14, %v12_v1 }
  0xa7   :  { %v35_v16 = vmul.f32 %v42_v11, %v27_v15 }
  0xa9   :  { %37 = vst [vmem:[%s79_s2 + $0x8] sm:$0xff] %v35_v16 }

</bundles_post_ra>
